<compile_context>
chip_gen: v6e
topology: v6e:2x2x1
jax: 0.10.0
libtpu: 0.0.40
codegen_flags: <defaults>
</compile_context>

<pallas_src>
import functools

import jax
import jax.numpy as jnp
from jax.experimental import pallas as pl
from jax.experimental.pallas import tpu as pltpu

IN_FEATURES = 1024
OUT_FEATURES = 2
OUT_PAD = 128  # lane-dense padded output width


def _round_up(v, m):
    return ((v + m - 1) // m) * m


def _linear_kernel(x_ref, w_ref, b_ref, o_ref):
    # x_ref: (bm, 1024)  w_ref: (1024, 128)  b_ref: (1, 128)  o_ref: (bm, 128)
    acc = jnp.dot(x_ref[...], w_ref[...], preferred_element_type=jnp.float32)
    o_ref[...] = (acc + b_ref[...]).astype(o_ref.dtype)


@functools.partial(jax.jit, static_argnames=("block_m",))
def resnet18_regr_forward(x, w_t, b, *, block_m=1024):
    """x: (B, 1024) f32; w_t: (1024, 2); b: (1, 2) -> (B, 2)."""
    B, K = x.shape
    assert K == IN_FEATURES

    # Effective row-tile: as large as requested, but no larger than needed, and
    # split so the grid has >= 2 steps for big batches (v7x dual-TC sharding).
    bm = min(block_m, _round_up(B, 8))
    if B > block_m:
        bm = min(block_m, _round_up(pl.cdiv(B, 2), 8))
    bm = max(bm, 8)

    # Lane-dense output: pad weight/bias from 2 -> 128 output columns.
    w_pad = jnp.zeros((IN_FEATURES, OUT_PAD), w_t.dtype).at[:, :OUT_FEATURES].set(w_t)
    b_pad = jnp.zeros((1, OUT_PAD), b.dtype).at[:, :OUT_FEATURES].set(b)

    grid = (pl.cdiv(B, bm),)
    y_pad = pl.pallas_call(
        _linear_kernel,
        out_shape=jax.ShapeDtypeStruct((B, OUT_PAD), x.dtype),
        grid_spec=pltpu.PrefetchScalarGridSpec(
            num_scalar_prefetch=0,
            grid=grid,
            in_specs=[
                pl.BlockSpec((bm, IN_FEATURES), lambda i: (i, 0)),
                pl.BlockSpec((IN_FEATURES, OUT_PAD), lambda i: (0, 0)),
                pl.BlockSpec((1, OUT_PAD), lambda i: (0, 0)),
            ],
            out_specs=pl.BlockSpec((bm, OUT_PAD), lambda i: (i, 0)),
        ),
        compiler_params=pltpu.CompilerParams(
            dimension_semantics=("parallel",),
        ),
    )(x, w_pad, b_pad)

    # Drop the zero-padded output lanes (fused into the surrounding jit).
    return y_pad[:, :OUT_FEATURES]


def init_params(key):
    """Deterministic init mimicking nn.Linear default (uniform +/- 1/sqrt(fan_in))."""
    kw, kb = jax.random.split(key)
    bound = 1.0 / jnp.sqrt(jnp.float32(IN_FEATURES))
    # PyTorch stores weight as (out, in); we keep it transposed for the kernel.
    w = jax.random.uniform(
        kw, (OUT_FEATURES, IN_FEATURES), jnp.float32, -bound, bound
    )
    b = jax.random.uniform(kb, (OUT_FEATURES,), jnp.float32, -bound, bound)
    return w.T, b.reshape(1, OUT_FEATURES)


if __name__ == "__main__":
    key = jax.random.PRNGKey(0)
    k_x, k_p = jax.random.split(key)

    batch = 8
    x = jax.random.normal(k_x, (batch, IN_FEATURES), jnp.float32)
    w_t, b = init_params(k_p)

    y = resnet18_regr_forward(x, w_t, b)
    y = jax.block_until_ready(y)

    # Reference check against plain JAX.
    y_ref = x @ w_t + b
    assert y.shape == (batch, OUT_FEATURES)
    assert jnp.allclose(y, y_ref, atol=1e-4, rtol=1e-4)

    print("KERNEL_OK")
</pallas_src>

<mosaic_0001>
module attributes {stable_mosaic.version = 11 : i64} {
  func.func @_linear_kernel(%arg0: i32, %arg1: memref<8x1024xf32, #tpu.memory_space<vmem>>, %arg2: memref<1024x128xf32, #tpu.memory_space<vmem>>, %arg3: memref<1x128xf32, #tpu.memory_space<vmem>>, %arg4: memref<8x128xf32, #tpu.memory_space<vmem>>) attributes {dimension_semantics = [#tpu.dimension_semantics<parallel>], iteration_bounds = array<i64: 1>, scalar_prefetch = 0 : i64, scratch_operands = 0 : i64, tpu.core_type = #tpu.core_type<tc>, window_params = [{transform_indices = @transform_0, window_bounds = array<i64: 8, 1024>}, {pipeline_mode = #tpu.pipeline_mode<synchronous>, transform_indices = @transform_1, window_bounds = array<i64: 1024, 128>}, {pipeline_mode = #tpu.pipeline_mode<synchronous>, transform_indices = @transform_2, window_bounds = array<i64: 1, 128>}, {transform_indices = @transform_3, window_bounds = array<i64: 8, 128>}]} {
    %c0 = arith.constant 0 : index
    %c0_0 = arith.constant 0 : index
    %0 = vector.load %arg1[%c0, %c0_0] : memref<8x1024xf32, #tpu.memory_space<vmem>>, vector<8x1024xf32>
    %c0_1 = arith.constant 0 : index
    %c0_2 = arith.constant 0 : index
    %1 = vector.load %arg2[%c0_1, %c0_2] : memref<1024x128xf32, #tpu.memory_space<vmem>>, vector<1024x128xf32>
    %cst = arith.constant dense<0.000000e+00> : vector<8x128xf32>
    %2 = tpu.matmul %0, %1, %cst {dimension_numbers = #tpu.dot_dimension_numbers<[1], [0], [0], [1], [0, 0, 1, 1], [], []>} : vector<8x1024xf32>, vector<1024x128xf32>, vector<8x128xf32> -> vector<8x128xf32>
    %c0_3 = arith.constant 0 : index
    %c0_4 = arith.constant 0 : index
    %3 = vector.load %arg3[%c0_3, %c0_4] : memref<1x128xf32, #tpu.memory_space<vmem>>, vector<1x128xf32>
    %4 = vector.broadcast %3 : vector<1x128xf32> to vector<8x128xf32>
    %5 = arith.addf %2, %4 : vector<8x128xf32>
    %c0_5 = arith.constant 0 : index
    %c0_6 = arith.constant 0 : index
    %6 = vector.load %arg4[%c0_5, %c0_6] : memref<8x128xf32, #tpu.memory_space<vmem>>, vector<8x128xf32>
    tpu.vector_store %arg4[%c0_5, %c0_6], %5 {strides = array<i32>} : memref<8x128xf32, #tpu.memory_space<vmem>>, vector<8x128xf32>,
    return
  }
  func.func @transform_0(%arg0: i32) -> (i32, i32) {
    %c0_i32 = arith.constant 0 : i32
    %c0_i32_0 = arith.constant 0 : i32
    return %arg0, %c0_i32 : i32, i32
  }
  func.func @transform_1(%arg0: i32) -> (i32, i32) {
    %c0_i32 = arith.constant 0 : i32
    %c0_i32_0 = arith.constant 0 : i32
    %c0_i32_1 = arith.constant 0 : i32
    return %c0_i32, %c0_i32_0 : i32, i32
  }
  func.func @transform_2(%arg0: i32) -> (i32, i32) {
    %c0_i32 = arith.constant 0 : i32
    %c0_i32_0 = arith.constant 0 : i32
    %c0_i32_1 = arith.constant 0 : i32
    return %c0_i32, %c0_i32_0 : i32, i32
  }
  func.func @transform_3(%arg0: i32) -> (i32, i32) {
    %c0_i32 = arith.constant 0 : i32
    %c0_i32_0 = arith.constant 0 : i32
    return %arg0, %c0_i32 : i32, i32
  }
}

</mosaic_0001>

<bundles_post_ra>
// kernel: resnet18_regr_forward.1
= control target key start
LH: loop header
LB: loop body
LE: loop exit
PB: predicated region body
PF: predicated region fallthrough
CT: control target
= control target key end

     0   :  { %s1017_s1 = inlined_call_operand.vmem [shape: f32[1024,128], index: 1, kind: input, shape index: {}]   ;;  %s1018_s0 = inlined_call_operand.vmem [shape: f32[8,1024], index: 0, kind: input, shape index: {}]   ;;  %s1019_s2 = inlined_call_operand.vmem [shape: f32[1,128], index: 2, kind: input, shape index: {}]   ;;  %s1020_s3 = inlined_call_operand.vmem [shape: f32[8,128], index: 3, kind: output, shape index: {}]  }
   0x1   :  { %v53_v0 = vld [vmem:[%s1017_s1 + $0xf8] sm:$0xff]  ;;  %v52_v4 = vld [vmem:[%s1017_s1 + $0xf0] sm:$0xff]  ;;  %v51_v8 = vld [vmem:[%s1017_s1 + $0xe8] sm:$0xff] }
   0x2   :  { %v85_v1 = vld [vmem:[%s1017_s1 + $0x1f8] sm:$0xff]  ;;  %443 = vmatprep.subr.mxu0 %v53_v0  ;;  %v84_v5 = vld [vmem:[%s1017_s1 + $0x1f0] sm:$0xff]  ;;  %v83_v9 = vld [vmem:[%s1017_s1 + $0x1e8] sm:$0xff] }
   0x3   :  { %v37_v2 = vld [vmem:[%s1017_s1 + $0x78] sm:$0xff]  ;;  %478 = vmatprep.subr.mxu1 %v85_v1  ;;  %v36_v6 = vld [vmem:[%s1017_s1 + $0x70] sm:$0xff]  ;;  %v35_v10 = vld [vmem:[%s1017_s1 + $0x68] sm:$0xff] }
   0x4   :  { %v69_v3 = vld [vmem:[%s1017_s1 + $0x178] sm:$0xff]  ;;  %444 = vmatpush3.msra.mxu0 %v37_v2  ;;  %v68_v7 = vld [vmem:[%s1017_s1 + $0x170] sm:$0xff]  ;;  %v67_v11 = vld [vmem:[%s1017_s1 + $0x168] sm:$0xff] }
   0x5   :  { %479 = vmatpush3.msra.mxu1 %v69_v3  ;;  %445 = vmatprep.subr.mxu0 %v52_v4  ;;  %v50_v12 = vld [vmem:[%s1017_s1 + $0xe0] sm:$0xff]  ;;  %v49_v16 = vld [vmem:[%s1017_s1 + $0xd8] sm:$0xff]  ;;  %v48_v20 = vld [vmem:[%s1017_s1 + $0xd0] sm:$0xff] }
   0x6   :  { %480 = vmatprep.subr.mxu1 %v84_v5  ;;  %446 = vmatpush3.msra.mxu0 %v36_v6  ;;  %v82_v13 = vld [vmem:[%s1017_s1 + $0x1e0] sm:$0xff]  ;;  %v81_v17 = vld [vmem:[%s1017_s1 + $0x1d8] sm:$0xff]  ;;  %v80_v21 = vld [vmem:[%s1017_s1 + $0x1d0] sm:$0xff] }
   0x7   :  { %481 = vmatpush3.msra.mxu1 %v68_v7  ;;  %447 = vmatprep.subr.mxu0 %v51_v8  ;;  %v34_v14 = vld [vmem:[%s1017_s1 + $0x60] sm:$0xff]  ;;  %v33_v18 = vld [vmem:[%s1017_s1 + $0x58] sm:$0xff]  ;;  %v32_v22 = vld [vmem:[%s1017_s1 + $0x50] sm:$0xff] }
   0x8   :  { %482 = vmatprep.subr.mxu1 %v83_v9  ;;  %v66_v15 = vld [vmem:[%s1017_s1 + $0x160] sm:$0xff]  ;;  %448 = vmatpush3.msra.mxu0 %v35_v10  ;;  %v65_v19 = vld [vmem:[%s1017_s1 + $0x158] sm:$0xff]  ;;  %v64_v23 = vld [vmem:[%s1017_s1 + $0x150] sm:$0xff] }
   0x9   :  { %483 = vmatpush3.msra.mxu1 %v67_v11  ;;  %449 = vmatprep.subr.mxu0 %v50_v12  ;;  %v47_v24 = vld [vmem:[%s1017_s1 + $0xc8] sm:$0xff]  ;;  %v46_v28 = vld [vmem:[%s1017_s1 + $0xc0] sm:$0xff]  ;;  %v45_v32 = vld [vmem:[%s1017_s1 + $0xb8] sm:$0xff] }
   0xa   :  { %484 = vmatprep.subr.mxu1 %v82_v13  ;;  %450 = vmatpush3.msra.mxu0 %v34_v14  ;;  %v79_v25 = vld [vmem:[%s1017_s1 + $0x1c8] sm:$0xff]  ;;  %v78_v29 = vld [vmem:[%s1017_s1 + $0x1c0] sm:$0xff]  ;;  %v77_v33 = vld [vmem:[%s1017_s1 + $0x1b8] sm:$0xff] }
   0xb   :  { %485 = vmatpush3.msra.mxu1 %v66_v15  ;;  %451 = vmatprep.subr.mxu0 %v49_v16  ;;  %v31_v26 = vld [vmem:[%s1017_s1 + $0x48] sm:$0xff]  ;;  %v30_v30 = vld [vmem:[%s1017_s1 + $0x40] sm:$0xff]  ;;  %v29_v34 = vld [vmem:[%s1017_s1 + $0x38] sm:$0xff] }
   0xc   :  { %486 = vmatprep.subr.mxu1 %v81_v17  ;;  %452 = vmatpush3.msra.mxu0 %v33_v18  ;;  %v63_v27 = vld [vmem:[%s1017_s1 + $0x148] sm:$0xff]  ;;  %v62_v31 = vld [vmem:[%s1017_s1 + $0x140] sm:$0xff]  ;;  %v61_v35 = vld [vmem:[%s1017_s1 + $0x138] sm:$0xff] }
   0xd   :  { %487 = vmatpush3.msra.mxu1 %v65_v19  ;;  %453 = vmatprep.subr.mxu0 %v48_v20  ;;  %v44_v36 = vld [vmem:[%s1017_s1 + $0xb0] sm:$0xff]  ;;  %v43_v40 = vld [vmem:[%s1017_s1 + $0xa8] sm:$0xff]  ;;  %v42_v44 = vld [vmem:[%s1017_s1 + $0xa0] sm:$0xff] }
   0xe   :  { %488 = vmatprep.subr.mxu1 %v80_v21  ;;  %454 = vmatpush3.msra.mxu0 %v32_v22  ;;  %v76_v37 = vld [vmem:[%s1017_s1 + $0x1b0] sm:$0xff]  ;;  %v75_v41 = vld [vmem:[%s1017_s1 + $0x1a8] sm:$0xff]  ;;  %v74_v45 = vld [vmem:[%s1017_s1 + $0x1a0] sm:$0xff] }
   0xf   :  { %489 = vmatpush3.msra.mxu1 %v64_v23  ;;  %455 = vmatprep.subr.mxu0 %v47_v24  ;;  %v28_v38 = vld [vmem:[%s1017_s1 + $0x30] sm:$0xff]  ;;  %v27_v42 = vld [vmem:[%s1017_s1 + $0x28] sm:$0xff]  ;;  %v26_v46 = vld [vmem:[%s1017_s1 + $0x20] sm:$0xff] }
  0x10   :  { %490 = vmatprep.subr.mxu1 %v79_v25  ;;  %456 = vmatpush3.msra.mxu0 %v31_v26  ;;  %v60_v39 = vld [vmem:[%s1017_s1 + $0x130] sm:$0xff]  ;;  %v59_v43 = vld [vmem:[%s1017_s1 + $0x128] sm:$0xff]  ;;  %v58_v47 = vld [vmem:[%s1017_s1 + $0x120] sm:$0xff] }
  0x11   :  { %491 = vmatpush3.msra.mxu1 %v63_v27  ;;  %457 = vmatprep.subr.mxu0 %v46_v28  ;;  %v41_v48 = vld [vmem:[%s1017_s1 + $0x98] sm:$0xff]  ;;  %v40_v52 = vld [vmem:[%s1017_s1 + $0x90] sm:$0xff]  ;;  %v39_v56 = vld [vmem:[%s1017_s1 + $0x88] sm:$0xff] }
  0x12   :  { %492 = vmatprep.subr.mxu1 %v78_v29  ;;  %458 = vmatpush3.msra.mxu0 %v30_v30  ;;  %v73_v49 = vld [vmem:[%s1017_s1 + $0x198] sm:$0xff]  ;;  %v72_v53 = vld [vmem:[%s1017_s1 + $0x190] sm:$0xff]  ;;  %v71_v57 = vld [vmem:[%s1017_s1 + $0x188] sm:$0xff] }
  0x13   :  { %493 = vmatpush3.msra.mxu1 %v62_v31  ;;  %459 = vmatprep.subr.mxu0 %v45_v32  ;;  %v25_v50 = vld [vmem:[%s1017_s1 + $0x18] sm:$0xff]  ;;  %v24_v54 = vld [vmem:[%s1017_s1 + $0x10] sm:$0xff]  ;;  %v23_v58 = vld [vmem:[%s1017_s1 + $0x8] sm:$0xff] }
  0x14   :  { %494 = vmatprep.subr.mxu1 %v77_v33  ;;  %460 = vmatpush3.msra.mxu0 %v29_v34  ;;  %v57_v51 = vld [vmem:[%s1017_s1 + $0x118] sm:$0xff]  ;;  %v56_v55 = vld [vmem:[%s1017_s1 + $0x110] sm:$0xff]  ;;  %v55_v59 = vld [vmem:[%s1017_s1 + $0x108] sm:$0xff] }
  0x15   :  { %495 = vmatpush3.msra.mxu1 %v61_v35  ;;  %461 = vmatprep.subr.mxu0 %v44_v36  ;;  %v38_v60 = vld [vmem:[%s1017_s1 + $0x80] sm:$0xff]  ;;  %v15_v63 = vld [vmem:[%s1018_s0 + $0x8] sm:$0xff]  ;;  %v17_v2 = vld [vmem:[%s1018_s0 + $0x18] sm:$0xff] }
  0x16   :  { %496 = vmatprep.subr.mxu1 %v76_v37  ;;  %462 = vmatpush3.msra.mxu0 %v28_v38  ;;  %v70_v61 = vld [vmem:[%s1017_s1 + $0x180] sm:$0xff]  ;;  %v117_v3 = vld [vmem:[%s1017_s1 + $0x2f8] sm:$0xff]  ;;  %v16_v5 = vld [vmem:[%s1018_s0 + $0x10] sm:$0xff] }
  0x17   :  { %497 = vmatpush3.msra.mxu1 %v60_v39  ;;  %463 = vmatprep.subr.mxu0 %v43_v40  ;;  %v22_v62 = vld [vmem:[%s1017_s1] sm:$0xff]  ;;  %v149_v4 = vld [vmem:[%s1017_s1 + $0x3f8] sm:$0xff]  ;;  %v116_v8 = vld [vmem:[%s1017_s1 + $0x2f0] sm:$0xff] }
  0x18   :  { %498 = vmatprep.subr.mxu1 %v75_v41  ;;  %464 = vmatpush3.msra.mxu0 %v27_v42  ;;  %v54_v0 = vld [vmem:[%s1017_s1 + $0x100] sm:$0xff]  ;;  %v101_v6 = vld [vmem:[%s1017_s1 + $0x278] sm:$0xff]  ;;  %v148_v9 = vld [vmem:[%s1017_s1 + $0x3f0] sm:$0xff] }
  0x19   :  { %499 = vmatpush3.msra.mxu1 %v59_v43  ;;  %465 = vmatprep.subr.mxu0 %v42_v44  ;;  %v14_v1 = vld [vmem:[%s1018_s0] sm:$0xff]  ;;  %v133_v7 = vld [vmem:[%s1017_s1 + $0x378] sm:$0xff]  ;;  %v100_v10 = vld [vmem:[%s1017_s1 + $0x270] sm:$0xff] }
  0x1a   :  { %500 = vmatprep.subr.mxu1 %v74_v45  ;;  %466 = vmatpush3.msra.mxu0 %v26_v46  ;;  %v132_v11 = vld [vmem:[%s1017_s1 + $0x370] sm:$0xff]  ;;  %v115_v12 = vld [vmem:[%s1017_s1 + $0x2e8] sm:$0xff]  ;;  %v114_v16 = vld [vmem:[%s1017_s1 + $0x2e0] sm:$0xff] }
  0x1b   :  { %501 = vmatpush3.msra.mxu1 %v58_v47  ;;  %467 = vmatprep.subr.mxu0 %v41_v48  ;;  %v147_v13 = vld [vmem:[%s1017_s1 + $0x3e8] sm:$0xff]  ;;  %v146_v17 = vld [vmem:[%s1017_s1 + $0x3e0] sm:$0xff]  ;;  %v113_v20 = vld [vmem:[%s1017_s1 + $0x2d8] sm:$0xff] }
  0x1c   :  { %502 = vmatprep.subr.mxu1 %v73_v49  ;;  %468 = vmatpush3.msra.mxu0 %v25_v50  ;;  %v99_v14 = vld [vmem:[%s1017_s1 + $0x268] sm:$0xff]  ;;  %v98_v18 = vld [vmem:[%s1017_s1 + $0x260] sm:$0xff]  ;;  %v145_v21 = vld [vmem:[%s1017_s1 + $0x3d8] sm:$0xff] }
  0x1d   :  { %503 = vmatpush3.msra.mxu1 %v57_v51  ;;  %469 = vmatprep.subr.mxu0 %v40_v52  ;;  %v131_v15 = vld [vmem:[%s1017_s1 + $0x368] sm:$0xff]  ;;  %v130_v19 = vld [vmem:[%s1017_s1 + $0x360] sm:$0xff]  ;;  %v97_v22 = vld [vmem:[%s1017_s1 + $0x258] sm:$0xff] }
  0x1e   :  { %504 = vmatprep.subr.mxu1 %v72_v53  ;;  %470 = vmatpush3.msra.mxu0 %v24_v54  ;;  %v129_v23 = vld [vmem:[%s1017_s1 + $0x358] sm:$0xff]  ;;  %v112_v24 = vld [vmem:[%s1017_s1 + $0x2d0] sm:$0xff]  ;;  %v111_v28 = vld [vmem:[%s1017_s1 + $0x2c8] sm:$0xff] }
  0x1f   :  { %505 = vmatpush3.msra.mxu1 %v56_v55  ;;  %471 = vmatprep.subr.mxu0 %v39_v56  ;;  %v144_v25 = vld [vmem:[%s1017_s1 + $0x3d0] sm:$0xff]  ;;  %v143_v29 = vld [vmem:[%s1017_s1 + $0x3c8] sm:$0xff]  ;;  %v110_v32 = vld [vmem:[%s1017_s1 + $0x2c0] sm:$0xff] }
  0x20   :  { %506 = vmatprep.subr.mxu1 %v71_v57  ;;  %472 = vmatpush3.msra.mxu0 %v23_v58  ;;  %v96_v26 = vld [vmem:[%s1017_s1 + $0x250] sm:$0xff]  ;;  %v95_v30 = vld [vmem:[%s1017_s1 + $0x248] sm:$0xff]  ;;  %v142_v33 = vld [vmem:[%s1017_s1 + $0x3c0] sm:$0xff] }
  0x21   :  { %507 = vmatpush3.msra.mxu1 %v55_v59  ;;  %473 = vmatprep.subr.mxu0 %v38_v60  ;;  %v128_v27 = vld [vmem:[%s1017_s1 + $0x350] sm:$0xff]  ;;  %v127_v31 = vld [vmem:[%s1017_s1 + $0x348] sm:$0xff]  ;;  %v94_v34 = vld [vmem:[%s1017_s1 + $0x240] sm:$0xff] }
  0x22   :  { %508 = vmatprep.subr.mxu1 %v70_v61  ;;  %474 = vmatpush3.msra.mxu0 %v22_v62  ;;  %v126_v35 = vld [vmem:[%s1017_s1 + $0x340] sm:$0xff]  ;;  %v109_v36 = vld [vmem:[%s1017_s1 + $0x2b8] sm:$0xff]  ;;  %v108_v40 = vld [vmem:[%s1017_s1 + $0x2b0] sm:$0xff] }
  0x23   :  { %221 = vmatprep.mubr.f32.mxu0 %v15_v63  ;;  %509 = vmatpush3.msra.mxu1 %v54_v0  ;;  %v141_v37 = vld [vmem:[%s1017_s1 + $0x3b8] sm:$0xff]  ;;  %v140_v41 = vld [vmem:[%s1017_s1 + $0x3b0] sm:$0xff]  ;;  %v107_v44 = vld [vmem:[%s1017_s1 + $0x2a8] sm:$0xff] }
  0x24   :  { %222 = vmatmul.mubr.f32.vlgmr.msra.gmra.mxu0 %v14_v1  ;;  %291 = vmatprep.mubr.f32.mxu1 %v17_v2  ;;  %v93_v38 = vld [vmem:[%s1017_s1 + $0x238] sm:$0xff]  ;;  %v92_v42 = vld [vmem:[%s1017_s1 + $0x230] sm:$0xff]  ;;  %v139_v45 = vld [vmem:[%s1017_s1 + $0x3a8] sm:$0xff] }
  0x25   :  { %513 = vmatprep.subr.mxu0 %v117_v3  ;;  %548 = vmatprep.subr.mxu1 %v149_v4  ;;  %v125_v39 = vld [vmem:[%s1017_s1 + $0x338] sm:$0xff]  ;;  %v124_v43 = vld [vmem:[%s1017_s1 + $0x330] sm:$0xff]  ;;  %v91_v46 = vld [vmem:[%s1017_s1 + $0x228] sm:$0xff] }
  0x26   :  { %292 = vmatmul.mubr.f32.vlgmr.msra.gmra.mxu1 %v16_v5  ;;  %514 = vmatpush3.msra.mxu0 %v101_v6  ;;  %v123_v47 = vld [vmem:[%s1017_s1 + $0x328] sm:$0xff]  ;;  %v106_v48 = vld [vmem:[%s1017_s1 + $0x2a0] sm:$0xff]  ;;  %v105_v52 = vld [vmem:[%s1017_s1 + $0x298] sm:$0xff] }
  0x27   :  { %549 = vmatpush3.msra.mxu1 %v133_v7  ;;  %515 = vmatprep.subr.mxu0 %v116_v8  ;;  %v138_v49 = vld [vmem:[%s1017_s1 + $0x3a0] sm:$0xff]  ;;  %v137_v53 = vld [vmem:[%s1017_s1 + $0x398] sm:$0xff]  ;;  %v104_v56 = vld [vmem:[%s1017_s1 + $0x290] sm:$0xff] }
  0x28   :  { %550 = vmatprep.subr.mxu1 %v148_v9  ;;  %516 = vmatpush3.msra.mxu0 %v100_v10  ;;  %v90_v50 = vld [vmem:[%s1017_s1 + $0x220] sm:$0xff]  ;;  %v89_v54 = vld [vmem:[%s1017_s1 + $0x218] sm:$0xff]  ;;  %v136_v57 = vld [vmem:[%s1017_s1 + $0x390] sm:$0xff] }
  0x29   :  { %551 = vmatpush3.msra.mxu1 %v132_v11  ;;  %517 = vmatprep.subr.mxu0 %v115_v12  ;;  %v122_v51 = vld [vmem:[%s1017_s1 + $0x320] sm:$0xff]  ;;  %v121_v55 = vld [vmem:[%s1017_s1 + $0x318] sm:$0xff]  ;;  %v88_v58 = vld [vmem:[%s1017_s1 + $0x210] sm:$0xff] }
  0x2a   :  { %552 = vmatprep.subr.mxu1 %v147_v13  ;;  %518 = vmatpush3.msra.mxu0 %v99_v14  ;;  %v120_v59 = vld [vmem:[%s1017_s1 + $0x310] sm:$0xff]  ;;  %v103_v60 = vld [vmem:[%s1017_s1 + $0x288] sm:$0xff]  ;;  %v102_v0 = vld [vmem:[%s1017_s1 + $0x280] sm:$0xff] }
  0x2b   :  { %553 = vmatpush3.msra.mxu1 %v131_v15  ;;  %519 = vmatprep.subr.mxu0 %v114_v16  ;;  %v135_v61 = vld [vmem:[%s1017_s1 + $0x388] sm:$0xff]  ;;  %v134_v1 = vld [vmem:[%s1017_s1 + $0x380] sm:$0xff]  ;;  %v21_v5 = vld [vmem:[%s1018_s0 + $0x38] sm:$0xff] }
  0x2c   :  { %554 = vmatprep.subr.mxu1 %v146_v17  ;;  %520 = vmatpush3.msra.mxu0 %v98_v18  ;;  %v87_v62 = vld [vmem:[%s1017_s1 + $0x208] sm:$0xff]  ;;  %v86_v2 = vld [vmem:[%s1017_s1 + $0x200] sm:$0xff]  ;;  %v20_v7 = vld [vmem:[%s1018_s0 + $0x30] sm:$0xff] }
  0x2d   :  { %555 = vmatpush3.msra.mxu1 %v130_v19  ;;  %521 = vmatprep.subr.mxu0 %v113_v20  ;;  %v119_v63 = vld [vmem:[%s1017_s1 + $0x308] sm:$0xff]  ;;  %v118_v4 = vld [vmem:[%s1017_s1 + $0x300] sm:$0xff] }
  0x2e   :  { %556 = vmatprep.subr.mxu1 %v145_v21  ;;  %522 = vmatpush3.msra.mxu0 %v97_v22  ;;  %v19_v3 = vld [vmem:[%s1018_s0 + $0x28] sm:$0xff]  ;;  %v18_v6 = vld [vmem:[%s1018_s0 + $0x20] sm:$0xff] }
  0x2f   :  { %557 = vmatpush3.msra.mxu1 %v129_v23  ;;  %523 = vmatprep.subr.mxu0 %v112_v24  ;;  %v442_v12 = vld [vmem:[%s1019_s2] ss:$0 sm:$0xff] }
  0x30   :  { %558 = vmatprep.subr.mxu1 %v144_v25  ;;  %524 = vmatpush3.msra.mxu0 %v96_v26 }
  0x31   :  { %559 = vmatpush3.msra.mxu1 %v128_v27  ;;  %525 = vmatprep.subr.mxu0 %v111_v28 }
  0x32   :  { %560 = vmatprep.subr.mxu1 %v143_v29  ;;  %526 = vmatpush3.msra.mxu0 %v95_v30 }
  0x33   :  { %561 = vmatpush3.msra.mxu1 %v127_v31  ;;  %527 = vmatprep.subr.mxu0 %v110_v32 }
  0x34   :  { %562 = vmatprep.subr.mxu1 %v142_v33  ;;  %528 = vmatpush3.msra.mxu0 %v94_v34 }
  0x35   :  { %563 = vmatpush3.msra.mxu1 %v126_v35  ;;  %529 = vmatprep.subr.mxu0 %v109_v36 }
  0x36   :  { %564 = vmatprep.subr.mxu1 %v141_v37  ;;  %530 = vmatpush3.msra.mxu0 %v93_v38 }
  0x37   :  { %565 = vmatpush3.msra.mxu1 %v125_v39  ;;  %531 = vmatprep.subr.mxu0 %v108_v40 }
  0x38   :  { %566 = vmatprep.subr.mxu1 %v140_v41  ;;  %532 = vmatpush3.msra.mxu0 %v92_v42 }
  0x39   :  { %567 = vmatpush3.msra.mxu1 %v124_v43  ;;  %533 = vmatprep.subr.mxu0 %v107_v44 }
  0x3a   :  { %568 = vmatprep.subr.mxu1 %v139_v45  ;;  %534 = vmatpush3.msra.mxu0 %v91_v46 }
  0x3b   :  { %569 = vmatpush3.msra.mxu1 %v123_v47  ;;  %535 = vmatprep.subr.mxu0 %v106_v48 }
  0x3c   :  { %570 = vmatprep.subr.mxu1 %v138_v49  ;;  %536 = vmatpush3.msra.mxu0 %v90_v50 }
  0x3d   :  { %571 = vmatpush3.msra.mxu1 %v122_v51  ;;  %537 = vmatprep.subr.mxu0 %v105_v52 }
  0x3e   :  { %572 = vmatprep.subr.mxu1 %v137_v53  ;;  %538 = vmatpush3.msra.mxu0 %v89_v54 }
  0x3f   :  { %573 = vmatpush3.msra.mxu1 %v121_v55  ;;  %539 = vmatprep.subr.mxu0 %v104_v56 }
  0x40   :  { %574 = vmatprep.subr.mxu1 %v136_v57  ;;  %540 = vmatpush3.msra.mxu0 %v88_v58 }
  0x41   :  { %575 = vmatpush3.msra.mxu1 %v120_v59  ;;  %541 = vmatprep.subr.mxu0 %v103_v60 }
  0x42   :  { %576 = vmatprep.subr.mxu1 %v135_v61  ;;  %542 = vmatpush3.msra.mxu0 %v87_v62 }
  0x43   :  { %577 = vmatpush3.msra.mxu1 %v119_v63  ;;  %543 = vmatprep.subr.mxu0 %v102_v0 }
  0x44   :  { %578 = vmatprep.subr.mxu1 %v134_v1  ;;  %544 = vmatpush3.msra.mxu0 %v86_v2 }
  0x45   :  { %361 = vmatprep.mubr.f32.mxu0 %v19_v3  ;;  %579 = vmatpush3.msra.mxu1 %v118_v4 }
  0x46   :  { %431 = vmatprep.mubr.f32.mxu1 %v21_v5  ;;  %362 = vmatmul.mubr.f32.vlgmr.msra.gmra.mxu0 %v18_v6 }
  0x47   :  { %432 = vmatmul.mubr.f32.vlgmr.msra.gmra.mxu1 %v20_v7 }
  0xe4   :  { %v475_v8 = vpop.f32.mrf.mxu0 }
  0xe6   :  { %v510_v9 = vpop.f32.mrf.mxu1  ;;  %v476_v10 = vpop.f32.mrf.mxu0 }
  0xe7   :  { %v477_v11 = vadd.f32 %v476_v10, %v475_v8 }
  0xe8   :  { %v511_v13 = vpop.f32.mrf.mxu1 }
  0xe9   :  { %v224_v14 = vadd.f32 %v477_v11, %v442_v12  ;;  %v512_v15 = vadd.f32 %v511_v13, %v510_v9 }
  0xeb   :  { %v294_v20 = vadd.f32 %v512_v15, %v224_v14 }
 0x106   :  { %v545_v16 = vpop.f32.mrf.mxu0 }
 0x107   :  { %v580_v17 = vpop.f32.mrf.mxu1 }
 0x108   :  { %v546_v18 = vpop.f32.mrf.mxu0 }
 0x109   :  { %v581_v19 = vpop.f32.mrf.mxu1  ;;  %v547_v21 = vadd.f32 %v546_v18, %v545_v16 }
 0x10a   :  { %v582_v23 = vadd.f32 %v581_v19, %v580_v17 }
 0x10b   :  { %v364_v22 = vadd.f32 %v547_v21, %v294_v20 }
 0x10d   :  { %v434_v24 = vadd.f32 %v582_v23, %v364_v22 }
 0x10f   :  { %437 = vst [vmem:[%s1020_s3] sm:$0xff] %v434_v24 }

</bundles_post_ra>
